<compile_context>
chip_gen: v7x
topology: tpu7x:2x2x1
jax: 0.10.0
libtpu: 0.0.40
codegen_flags: <defaults>
</compile_context>

<pallas_src>
import functools

import jax
import jax.numpy as jnp
from jax import lax
from jax.experimental import pallas as pl
from jax.experimental.pallas import tpu as pltpu


# ------------------------------------------------------------------ the kernel
def decoder_kernel(lowf_ref, x_ref, interp_ref,
                   w_lowf_ref, w1x_ref, w1l_ref, w2_ref, w3_ref, bias_ref,
                   out_ref, *, seq_len):
    f32 = jnp.float32
    bf16 = jnp.bfloat16

    n_lanes = lowf_ref.shape[1]                 # padded slab width (multiple of 128)
    in_x = w2_ref.shape[1]
    out_lowf = w_lowf_ref.shape[0]
    num_classes = w3_ref.shape[0]

    bias = bias_ref[...]                        # (Cmax, 4) f32: packed BN shifts + final bias
    b_lowf = bias[:out_lowf, 0:1]
    b1 = bias[:in_x, 1:2]
    b2 = bias[:in_x, 2:3]
    b3 = bias[:num_classes, 3:4]

    # Per-segment boundary masks for the k=3 / pad=1 convs.  After a roll across the
    # (C, B*L) slab, the column that wrapped across a batch boundary (or the slab edge)
    # must be zeroed to reproduce PyTorch's zero padding.
    col = lax.broadcasted_iota(jnp.int32, (1, n_lanes), 1)
    lpos = col % seq_len
    mask_prev = (lpos != 0).astype(f32)                 # kills t == 0 of every segment
    mask_next = (lpos != seq_len - 1).astype(f32)       # kills t == L-1 of every segment

    def conv3(a, cout, b):
        # a: (3*cout, N) f32 = per-tap products at every position.
        # Combine taps with XLU rolls (non-negative shifts) + boundary masks.
        prev = pltpu.roll(a[0:cout], shift=1, axis=1) * mask_prev            # tap @ z[t-1]
        nxt = pltpu.roll(a[2 * cout:3 * cout], shift=n_lanes - 1, axis=1) * mask_next  # z[t+1]
        return prev + a[cout:2 * cout] + nxt + b

    # conv_for_lowf (1x1, bias-free) + folded BatchNorm + ReLU
    low = jnp.maximum(
        jnp.dot(w_lowf_ref[...], lowf_ref[...], preferred_element_type=f32) + b_lowf, 0.0)

    # F.interpolate(mode='linear', align_corners=True): block-diagonal matmul over lanes
    x_up = jnp.dot(x_ref[...], interp_ref[...], preferred_element_type=f32)   # (in_x, N)

    # conv1 (k=3) without torch.cat: split contraction (x part + lowf part), one accumulator.
    a1 = (jnp.dot(w1x_ref[...], x_up.astype(bf16), preferred_element_type=f32)
          + jnp.dot(w1l_ref[...], low.astype(bf16), preferred_element_type=f32))
    y = jnp.maximum(conv3(a1, in_x, b1), 0.0)           # BN folded; Dropout(0.5) = id (eval)

    # conv2 (k=3) + BN + ReLU; Dropout(0.1) = id (eval)
    a2 = jnp.dot(w2_ref[...], y.astype(bf16), preferred_element_type=f32)
    y = jnp.maximum(conv3(a2, in_x, b2), 0.0)

    # conv3 (1x1, with bias)
    out = jnp.dot(w3_ref[...], y.astype(bf16), preferred_element_type=f32) + b3
    out_ref[...] = out.astype(out_ref.dtype)


# ------------------------------------------------------------------- helpers
def make_interp_matrix(l_out, l_in, dtype=jnp.float32):
    """F.interpolate(mode='linear', align_corners=True) as an (l_out, l_in) matrix."""
    if l_in == 1:
        return jnp.ones((l_out, 1), dtype)
    if l_out == 1:
        return jnp.zeros((1, l_in), dtype).at[0, 0].set(1.0)
    scale = (l_in - 1) / (l_out - 1)
    src = jnp.arange(l_out, dtype=jnp.float32) * scale
    i0 = jnp.clip(jnp.floor(src).astype(jnp.int32), 0, l_in - 1)
    i1 = jnp.minimum(i0 + 1, l_in - 1)
    w1 = src - i0.astype(jnp.float32)
    w0 = 1.0 - w1
    rows = jnp.arange(l_out)
    m = jnp.zeros((l_out, l_in), dtype)
    return m.at[rows, i0].add(w0).at[rows, i1].add(w1)


def _fold_bn(gamma, beta, mean, var, eps=1e-5):
    scale = gamma / jnp.sqrt(var + eps)
    return scale, beta - mean * scale


def prepare_params(p, eps=1e-5):
    """Fold eval-mode BatchNorms into the conv weights, fuse k=3 taps, split w1, pack biases."""
    s_lowf, sh_lowf = _fold_bn(p["g_lowf"], p["b_lowf"], p["m_lowf"], p["v_lowf"], eps)
    s1, sh1 = _fold_bn(p["g1"], p["b1"], p["m1"], p["v1"], eps)
    s2, sh2 = _fold_bn(p["g2"], p["b2"], p["m2"], p["v2"], eps)

    bf16 = jnp.bfloat16
    w_lowf = (p["w_lowf"] * s_lowf[:, None]).astype(bf16)        # (out_lowf, in_lowf)

    def fuse_taps(w, s):
        # w: (Cout, Cin, 3) PyTorch Conv1d weight; fold BN scale, stack taps on the row axis.
        w = w * s[:, None, None]
        return jnp.concatenate([w[:, :, 0], w[:, :, 1], w[:, :, 2]], axis=0).astype(bf16)

    in_x = p["w2"].shape[0]
    w1x = fuse_taps(p["w1"][:, :in_x, :], s1)                    # (3*in_x, in_x)     x_up part
    w1l = fuse_taps(p["w1"][:, in_x:, :], s1)                    # (3*in_x, out_lowf) lowf part
    w2 = fuse_taps(p["w2"], s2)                                  # (3*in_x, in_x)
    w3 = p["w3"].astype(bf16)                                    # (num_classes, in_x)

    cmax = max(sh_lowf.shape[0], sh1.shape[0], sh2.shape[0], p["b3"].shape[0])
    col = lambda v: jnp.pad(v, (0, cmax - v.shape[0]))[:, None]
    bias_pack = jnp.concatenate(
        [col(sh_lowf), col(sh1), col(sh2), col(p["b3"])], axis=1).astype(jnp.float32)

    return dict(w_lowf=w_lowf, w1x=w1x, w1l=w1l, w2=w2, w3=w3, bias_pack=bias_pack)


# -------------------------------------------------------------------- wrapper
def decoder_forward(lowf, x, params):
    """lowf: (B, in_lowf, L_low), x: (B, in_x, L_x)  ->  (B, num_classes, L_low). NCL layout."""
    B, in_lowf, L_low = lowf.shape
    _, in_x, L_x = x.shape
    kp = prepare_params(params)
    num_classes = kp["w3"].shape[0]

    n_real = B * L_low
    n_pad = pl.cdiv(n_real, 128) * 128          # lane-dense slab width (>= 128)

    # Batch stacked into the lane dimension: (C, B*L) slabs, zero-padded to n_pad lanes.
    lowf_slab = jnp.transpose(lowf, (1, 0, 2)).reshape(in_lowf, n_real)
    lowf_slab = jnp.pad(lowf_slab, ((0, 0), (0, n_pad - n_real))).astype(jnp.bfloat16)
    x_slab = jnp.transpose(x, (1, 0, 2)).reshape(in_x, B * L_x).astype(jnp.bfloat16)

    # Per-batch linear interpolation as one block-diagonal matmul over the lane axis.
    interp_t = make_interp_matrix(L_low, L_x).T                        # (L_x, L_low)
    interp_bd = jnp.kron(jnp.eye(B, dtype=jnp.float32), interp_t)      # (B*L_x, B*L_low)
    interp_bd = jnp.pad(interp_bd, ((0, 0), (0, n_pad - n_real))).astype(jnp.bfloat16)

    full = lambda arr: pl.BlockSpec(arr.shape, lambda: (0,) * arr.ndim)

    flops = 2 * n_pad * (kp["w_lowf"].shape[0] * kp["w_lowf"].shape[1]
                         + in_x * B * L_x
                         + kp["w1x"].shape[0] * (kp["w1x"].shape[1] + kp["w1l"].shape[1])
                         + kp["w2"].shape[0] * kp["w2"].shape[1]
                         + num_classes * in_x)
    bytes_accessed = 2 * (lowf_slab.size + x_slab.size + interp_bd.size
                          + kp["w_lowf"].size + kp["w1x"].size + kp["w1l"].size
                          + kp["w2"].size + kp["w3"].size) \
                     + 4 * kp["bias_pack"].size + 4 * num_classes * n_pad

    out_slab = pl.pallas_call(
        functools.partial(decoder_kernel, seq_len=L_low),
        out_shape=jax.ShapeDtypeStruct((num_classes, n_pad), jnp.float32),
        in_specs=[full(lowf_slab), full(x_slab), full(interp_bd),
                  full(kp["w_lowf"]), full(kp["w1x"]), full(kp["w1l"]),
                  full(kp["w2"]), full(kp["w3"]), full(kp["bias_pack"])],
        out_specs=pl.BlockSpec((num_classes, n_pad), lambda: (0, 0)),
        cost_estimate=pl.CostEstimate(flops=flops, transcendentals=0,
                                      bytes_accessed=bytes_accessed),
    )(lowf_slab, x_slab, interp_bd,
      kp["w_lowf"], kp["w1x"], kp["w1l"], kp["w2"], kp["w3"], kp["bias_pack"])

    # TODO(synk): for large B*L_low, tile the lane slab over a "parallel" grid axis so
    # v7x's two TensorCores split it (keep grid=() on single-TC v5e/v6e).
    out = out_slab[:, :n_real].reshape(num_classes, B, L_low)
    return jnp.transpose(out, (1, 0, 2))


# -------------------------------------------------------- pure-JAX reference
def ref_forward(lowf, x, p, eps=1e-5):
    """Faithful eval-mode reference of the PyTorch Decoder (NCL layout, f32 highest precision)."""
    hi = lax.Precision.HIGHEST

    def bn(z, g, b, m, v):
        return (z - m[None, :, None]) * (g / jnp.sqrt(v + eps))[None, :, None] + b[None, :, None]

    low = jnp.einsum("oc,bcl->bol", p["w_lowf"], lowf, precision=hi)
    low = jax.nn.relu(bn(low, p["g_lowf"], p["b_lowf"], p["m_lowf"], p["v_lowf"]))

    interp = make_interp_matrix(low.shape[2], x.shape[2])
    x_up = jnp.einsum("ol,bcl->bco", interp, x, precision=hi)

    y = jnp.concatenate([x_up, low], axis=1)
    y = lax.conv_general_dilated(y, p["w1"], (1,), [(1, 1)],
                                 dimension_numbers=("NCH", "OIH", "NCH"), precision=hi)
    y = jax.nn.relu(bn(y, p["g1"], p["b1"], p["m1"], p["v1"]))
    y = lax.conv_general_dilated(y, p["w2"], (1,), [(1, 1)],
                                 dimension_numbers=("NCH", "OIH", "NCH"), precision=hi)
    y = jax.nn.relu(bn(y, p["g2"], p["b2"], p["m2"], p["v2"]))
    y = jnp.einsum("oc,bcl->bol", p["w3"], y, precision=hi) + p["b3"][None, :, None]
    return y


# -------------------------------------------------------------------- main
if __name__ == "__main__":
    # Decoder(in_x=32, num_classed=8, in_lowf=16, out_lowf=16); lowf carries the target length.
    B, in_x, num_classes, in_lowf, out_lowf = 2, 32, 8, 16, 16
    L_x, L_low = 8, 16

    key = jax.random.PRNGKey(0)
    ks = jax.random.split(key, 19)
    u = lambda k, shape, lo=-0.5, hi=0.5: jax.random.uniform(k, shape, jnp.float32, lo, hi)

    params = {
        # PyTorch-layout parameters (Conv1d weights (Cout, Cin[, k]); BatchNorm eval-mode stats).
        "w_lowf": u(ks[0], (out_lowf, in_lowf)),                  # Conv1d(in_lowf, out_lowf, 1, bias=False)
        "g_lowf": u(ks[1], (out_lowf,), 0.5, 1.5), "b_lowf": u(ks[2], (out_lowf,)),
        "m_lowf": u(ks[3], (out_lowf,)),           "v_lowf": u(ks[4], (out_lowf,), 0.5, 1.5),
        "w1": u(ks[5], (in_x, in_x + out_lowf, 3)),               # Conv1d(in_x+out_lowf, in_x, 3, pad=1, bias=False)
        "g1": u(ks[6], (in_x,), 0.5, 1.5), "b1": u(ks[7], (in_x,)),
        "m1": u(ks[8], (in_x,)),           "v1": u(ks[9], (in_x,), 0.5, 1.5),
        "w2": u(ks[10], (in_x, in_x, 3)),                         # Conv1d(in_x, in_x, 3, pad=1, bias=False)
        "g2": u(ks[11], (in_x,), 0.5, 1.5), "b2": u(ks[12], (in_x,)),
        "m2": u(ks[13], (in_x,)),           "v2": u(ks[14], (in_x,), 0.5, 1.5),
        "w3": u(ks[15], (num_classes, in_x)),                     # Conv1d(in_x, num_classes, 1) weight
        "b3": u(ks[16], (num_classes,)),                          # ... and bias
    }

    # inputs in PyTorch NCL layout
    lowf_in = jax.random.normal(ks[17], (B, in_lowf, L_low), jnp.float32)
    x_in = jax.random.normal(ks[18], (B, in_x, L_x), jnp.float32)

    ref = jax.block_until_ready(ref_forward(lowf_in, x_in, params))

    fwd = jax.jit(decoder_forward)
    out = jax.block_until_ready(fwd(lowf_in, x_in, params))
    assert out.shape == (B, num_classes, L_low)

    # bf16 MXU operands -> tolerance loosened vs. the pure-f32 reference.
    err = float(jnp.max(jnp.abs(out - ref)))
    scale = float(jnp.max(jnp.abs(ref))) + 1e-6
    assert err <= 0.05 * scale + 5e-3, f"Pallas mismatch vs reference: max_err={err}, ref_scale={scale}"

    print("KERNEL_OK")
</pallas_src>

<mosaic_0001>
module attributes {stable_mosaic.version = 11 : i64} {
  func.func private @main(%arg0: i32) attributes {dimension_semantics = [#tpu.dimension_semantics<core_parallel>], iteration_bounds = array<i64: 2>, tpu.core_type = #tpu.core_type<sc_scalar_subcore>, window_params = []} {
    return
  }
}

module attributes {stable_mosaic.version = 11 : i64} {
  func.func private @main(%arg0: i32) attributes {dimension_semantics = [#tpu.dimension_semantics<core_parallel>], iteration_bounds = array<i64: 2>, tpu.core_type = #tpu.core_type<sc_scalar_subcore>, window_params = []} {
    return
  }
}

module attributes {stable_mosaic.version = 11 : i64} {
  func.func @decoder_kernel(%arg0: memref<16x128xbf16, #tpu.memory_space<vmem>>, %arg1: memref<32x16xbf16, #tpu.memory_space<vmem>>, %arg2: memref<16x128xbf16, #tpu.memory_space<vmem>>, %arg3: memref<16x16xbf16, #tpu.memory_space<vmem>>, %arg4: memref<96x32xbf16, #tpu.memory_space<vmem>>, %arg5: memref<96x16xbf16, #tpu.memory_space<vmem>>, %arg6: memref<96x32xbf16, #tpu.memory_space<vmem>>, %arg7: memref<8x32xbf16, #tpu.memory_space<vmem>>, %arg8: memref<32x4xf32, #tpu.memory_space<vmem>>, %arg9: memref<8x128xf32, #tpu.memory_space<vmem>>) attributes {dimension_semantics = [], scalar_prefetch = 0 : i64, scratch_operands = 0 : i64, tpu.core_type = #tpu.core_type<tc>} {
    %c0 = arith.constant 0 : index
    %c0_0 = arith.constant 0 : index
    %0 = vector.load %arg8[%c0, %c0_0] : memref<32x4xf32, #tpu.memory_space<vmem>>, vector<32x4xf32>
    %1 = vector.extract_strided_slice %0 {offsets = [0, 0], sizes = [16, 1], strides = [1, 1]} : vector<32x4xf32> to vector<16x1xf32>
    %2 = vector.extract_strided_slice %0 {offsets = [0, 1], sizes = [32, 1], strides = [1, 1]} : vector<32x4xf32> to vector<32x1xf32>
    %3 = vector.extract_strided_slice %0 {offsets = [0, 2], sizes = [32, 1], strides = [1, 1]} : vector<32x4xf32> to vector<32x1xf32>
    %4 = vector.extract_strided_slice %0 {offsets = [0, 3], sizes = [8, 1], strides = [1, 1]} : vector<32x4xf32> to vector<8x1xf32>
    %5 = tpu.iota {dimensions = array<i32: 1>} : vector<1x128xi32>
    %c16_i32 = arith.constant 16 : i32
    %c0_i32 = arith.constant 0 : i32
    %6 = arith.cmpi eq, %c16_i32, %c0_i32 : i32
    %c1_i32 = arith.constant 1 : i32
    %7 = arith.select %6, %c1_i32, %c16_i32 : i32
    %8 = vector.broadcast %7 : i32 to vector<1x128xi32>
    %9 = arith.remsi %5, %8 : vector<1x128xi32>
    %c0_i32_1 = arith.constant 0 : i32
    %10 = vector.broadcast %c0_i32_1 : i32 to vector<1x128xi32>
    %11 = arith.cmpi ne, %9, %10 : vector<1x128xi32>
    %c0_i32_2 = arith.constant 0 : i32
    %12 = vector.broadcast %c0_i32_2 : i32 to vector<1x128xi32>
    %13 = arith.cmpi slt, %9, %12 : vector<1x128xi32>
    %c0_i32_3 = arith.constant 0 : i32
    %14 = arith.cmpi slt, %7, %c0_i32_3 : i32
    %15 = vector.broadcast %14 : i1 to vector<1x128xi1>
    %16 = vector.broadcast %15 : vector<1x128xi1> to vector<1x128xi1>
    %17 = arith.xori %13, %16 : vector<1x128xi1>
    %18 = arith.andi %17, %11 : vector<1x128xi1>
    %19 = vector.broadcast %7 : i32 to vector<1x128xi32>
    %20 = arith.addi %9, %19 : vector<1x128xi32>
    %21 = arith.select %18, %20, %9 : vector<1x128xi1>, vector<1x128xi32>
    %c0_i32_4 = arith.constant 0 : i32
    %22 = vector.broadcast %c0_i32_4 : i32 to vector<1x128xi32>
    %23 = arith.cmpi ne, %21, %22 : vector<1x128xi32>
    %24 = arith.extui %23 : vector<1x128xi1> to vector<1x128xi32>
    %25 = arith.sitofp %24 : vector<1x128xi32> to vector<1x128xf32>
    %c15_i32 = arith.constant 15 : i32
    %26 = vector.broadcast %c15_i32 : i32 to vector<1x128xi32>
    %27 = arith.cmpi ne, %21, %26 : vector<1x128xi32>
    %28 = arith.extui %27 : vector<1x128xi1> to vector<1x128xi32>
    %29 = arith.sitofp %28 : vector<1x128xi32> to vector<1x128xf32>
    %c0_5 = arith.constant 0 : index
    %c0_6 = arith.constant 0 : index
    %30 = vector.load %arg3[%c0_5, %c0_6] : memref<16x16xbf16, #tpu.memory_space<vmem>>, vector<16x16xbf16>
    %c0_7 = arith.constant 0 : index
    %c0_8 = arith.constant 0 : index
    %31 = vector.load %arg0[%c0_7, %c0_8] : memref<16x128xbf16, #tpu.memory_space<vmem>>, vector<16x128xbf16>
    %cst = arith.constant dense<0.000000e+00> : vector<16x128xf32>
    %32 = tpu.matmul %30, %31, %cst {dimension_numbers = #tpu.dot_dimension_numbers<[1], [0], [0], [1], [0, 0, 1, 1], [], []>} : vector<16x16xbf16>, vector<16x128xbf16>, vector<16x128xf32> -> vector<16x128xf32>
    %33 = vector.broadcast %1 : vector<16x1xf32> to vector<16x128xf32>
    %34 = arith.addf %32, %33 : vector<16x128xf32>
    %cst_9 = arith.constant 0.000000e+00 : f32
    %35 = vector.broadcast %cst_9 : f32 to vector<16x128xf32>
    %36 = arith.maximumf %34, %35 : vector<16x128xf32>
    %c0_10 = arith.constant 0 : index
    %c0_11 = arith.constant 0 : index
    %37 = vector.load %arg1[%c0_10, %c0_11] : memref<32x16xbf16, #tpu.memory_space<vmem>>, vector<32x16xbf16>
    %c0_12 = arith.constant 0 : index
    %c0_13 = arith.constant 0 : index
    %38 = vector.load %arg2[%c0_12, %c0_13] : memref<16x128xbf16, #tpu.memory_space<vmem>>, vector<16x128xbf16>
    %cst_14 = arith.constant dense<0.000000e+00> : vector<32x128xf32>
    %39 = tpu.matmul %37, %38, %cst_14 {dimension_numbers = #tpu.dot_dimension_numbers<[1], [0], [0], [1], [0, 0, 1, 1], [], []>} : vector<32x16xbf16>, vector<16x128xbf16>, vector<32x128xf32> -> vector<32x128xf32>
    %c0_15 = arith.constant 0 : index
    %c0_16 = arith.constant 0 : index
    %40 = vector.load %arg4[%c0_15, %c0_16] : memref<96x32xbf16, #tpu.memory_space<vmem>>, vector<96x32xbf16>
    %41 = arith.truncf %39 : vector<32x128xf32> to vector<32x128xbf16>
    %cst_17 = arith.constant dense<0.000000e+00> : vector<96x128xf32>
    %42 = tpu.matmul %40, %41, %cst_17 {dimension_numbers = #tpu.dot_dimension_numbers<[1], [0], [0], [1], [0, 0, 1, 1], [], []>} : vector<96x32xbf16>, vector<32x128xbf16>, vector<96x128xf32> -> vector<96x128xf32>
    %c0_18 = arith.constant 0 : index
    %c0_19 = arith.constant 0 : index
    %43 = vector.load %arg5[%c0_18, %c0_19] : memref<96x16xbf16, #tpu.memory_space<vmem>>, vector<96x16xbf16>
    %44 = arith.truncf %36 : vector<16x128xf32> to vector<16x128xbf16>
    %cst_20 = arith.constant dense<0.000000e+00> : vector<96x128xf32>
    %45 = tpu.matmul %43, %44, %cst_20 {dimension_numbers = #tpu.dot_dimension_numbers<[1], [0], [0], [1], [0, 0, 1, 1], [], []>} : vector<96x16xbf16>, vector<16x128xbf16>, vector<96x128xf32> -> vector<96x128xf32>
    %46 = arith.addf %42, %45 : vector<96x128xf32>
    %47 = vector.extract_strided_slice %46 {offsets = [0, 0], sizes = [32, 128], strides = [1, 1]} : vector<96x128xf32> to vector<32x128xf32>
    %c1_i32_21 = arith.constant 1 : i32
    %48 = tpu.dynamic_rotate %47 by %c1_i32_21 dim 1 : vector<32x128xf32>, i32 -> vector<32x128xf32>
    %49 = vector.broadcast %25 : vector<1x128xf32> to vector<32x128xf32>
    %50 = arith.mulf %48, %49 : vector<32x128xf32>
    %51 = vector.extract_strided_slice %46 {offsets = [64, 0], sizes = [32, 128], strides = [1, 1]} : vector<96x128xf32> to vector<32x128xf32>
    %c127_i32 = arith.constant 127 : i32
    %52 = tpu.dynamic_rotate %51 by %c127_i32 dim 1 : vector<32x128xf32>, i32 -> vector<32x128xf32>
    %53 = vector.broadcast %29 : vector<1x128xf32> to vector<32x128xf32>
    %54 = arith.mulf %52, %53 : vector<32x128xf32>
    %55 = vector.extract_strided_slice %46 {offsets = [32, 0], sizes = [32, 128], strides = [1, 1]} : vector<96x128xf32> to vector<32x128xf32>
    %56 = arith.addf %50, %55 : vector<32x128xf32>
    %57 = arith.addf %56, %54 : vector<32x128xf32>
    %58 = vector.broadcast %2 : vector<32x1xf32> to vector<32x128xf32>
    %59 = arith.addf %57, %58 : vector<32x128xf32>
    %cst_22 = arith.constant 0.000000e+00 : f32
    %60 = vector.broadcast %cst_22 : f32 to vector<32x128xf32>
    %61 = arith.maximumf %59, %60 : vector<32x128xf32>
    %c0_23 = arith.constant 0 : index
    %c0_24 = arith.constant 0 : index
    %62 = vector.load %arg6[%c0_23, %c0_24] : memref<96x32xbf16, #tpu.memory_space<vmem>>, vector<96x32xbf16>
    %63 = arith.truncf %61 : vector<32x128xf32> to vector<32x128xbf16>
    %cst_25 = arith.constant dense<0.000000e+00> : vector<96x128xf32>
    %64 = tpu.matmul %62, %63, %cst_25 {dimension_numbers = #tpu.dot_dimension_numbers<[1], [0], [0], [1], [0, 0, 1, 1], [], []>} : vector<96x32xbf16>, vector<32x128xbf16>, vector<96x128xf32> -> vector<96x128xf32>
    %65 = vector.extract_strided_slice %64 {offsets = [0, 0], sizes = [32, 128], strides = [1, 1]} : vector<96x128xf32> to vector<32x128xf32>
    %c1_i32_26 = arith.constant 1 : i32
    %66 = tpu.dynamic_rotate %65 by %c1_i32_26 dim 1 : vector<32x128xf32>, i32 -> vector<32x128xf32>
    %67 = vector.broadcast %25 : vector<1x128xf32> to vector<32x128xf32>
    %68 = arith.mulf %66, %67 : vector<32x128xf32>
    %69 = vector.extract_strided_slice %64 {offsets = [64, 0], sizes = [32, 128], strides = [1, 1]} : vector<96x128xf32> to vector<32x128xf32>
    %c127_i32_27 = arith.constant 127 : i32
    %70 = tpu.dynamic_rotate %69 by %c127_i32_27 dim 1 : vector<32x128xf32>, i32 -> vector<32x128xf32>
    %71 = vector.broadcast %29 : vector<1x128xf32> to vector<32x128xf32>
    %72 = arith.mulf %70, %71 : vector<32x128xf32>
    %73 = vector.extract_strided_slice %64 {offsets = [32, 0], sizes = [32, 128], strides = [1, 1]} : vector<96x128xf32> to vector<32x128xf32>
    %74 = arith.addf %68, %73 : vector<32x128xf32>
    %75 = arith.addf %74, %72 : vector<32x128xf32>
    %76 = vector.broadcast %3 : vector<32x1xf32> to vector<32x128xf32>
    %77 = arith.addf %75, %76 : vector<32x128xf32>
    %cst_28 = arith.constant 0.000000e+00 : f32
    %78 = vector.broadcast %cst_28 : f32 to vector<32x128xf32>
    %79 = arith.maximumf %77, %78 : vector<32x128xf32>
    %c0_29 = arith.constant 0 : index
    %c0_30 = arith.constant 0 : index
    %80 = vector.load %arg7[%c0_29, %c0_30] : memref<8x32xbf16, #tpu.memory_space<vmem>>, vector<8x32xbf16>
    %81 = arith.truncf %79 : vector<32x128xf32> to vector<32x128xbf16>
    %cst_31 = arith.constant dense<0.000000e+00> : vector<8x128xf32>
    %82 = tpu.matmul %80, %81, %cst_31 {dimension_numbers = #tpu.dot_dimension_numbers<[1], [0], [0], [1], [0, 0, 1, 1], [], []>} : vector<8x32xbf16>, vector<32x128xbf16>, vector<8x128xf32> -> vector<8x128xf32>
    %83 = vector.broadcast %4 : vector<8x1xf32> to vector<8x128xf32>
    %84 = arith.addf %82, %83 : vector<8x128xf32>
    %c0_32 = arith.constant 0 : index
    %c0_33 = arith.constant 0 : index
    %85 = vector.load %arg9[%c0_32, %c0_33] : memref<8x128xf32, #tpu.memory_space<vmem>>, vector<8x128xf32>
    tpu.vector_store %arg9[%c0_32, %c0_33], %84 {strides = array<i32>} : memref<8x128xf32, #tpu.memory_space<vmem>>, vector<8x128xf32>,
    return
  }
}

</mosaic_0001>

<bundles_post_ra>
// kernel: decoder_forward.1
= control target key start
LH: loop header
LB: loop body
LE: loop exit
PB: predicated region body
PF: predicated region fallthrough
CT: control target
= control target key end

     0   :  { %v997_v0 = vmov 0.0   ;;  %vm998_vm0 = vmmov 0   ;;  %v999_v3 = vmov 0   ;;  %vm82_vm1 = vcmask 130048   ;;  %s1001_s21 = smov 1   ;;  %s1228_s0 = inlined_call_operand.vmem [shape: bf16[16,128], index: 0, kind: input, shape index: {}]   ;;  %s1229_s3 = inlined_call_operand.vmem [shape: bf16[16,16], index: 3, kind: input, shape index: {}]   ;;  %s1230_s2 = inlined_call_operand.vmem [shape: bf16[16,128], index: 2, kind: input, shape index: {}]   ;;  %s1231_s1 = inlined_call_operand.vmem [shape: bf16[32,16], index: 1, kind: input, shape index: {}]   ;;  %s1232_s8 = inlined_call_operand.vmem [shape: f32[32,4], index: 8, kind: input, shape index: {}]   ;;  %s1233_s5 = inlined_call_operand.vmem [shape: bf16[96,16], index: 5, kind: input, shape index: {}]   ;;  %s1234_s4 = inlined_call_operand.vmem [shape: bf16[96,32], index: 4, kind: input, shape index: {}]   ;;  %s1235_s6 = inlined_call_operand.vmem [shape: bf16[96,32], index: 6, kind: input, shape index: {}]   ;;  %s1236_s7 = inlined_call_operand.vmem [shape: bf16[8,32], index: 7, kind: input, shape index: {}]   ;;  %s1237_s9 = inlined_call_operand.vmem [shape: f32[8,128], index: 9, kind: output, shape index: {}]  }
   0x1   :  { %882 = vmatprep.subr.bf16.mxu1 %v997_v0  ;;  %v974_v1 = vld [vmem:[%s1228_s0] sm:$0xff]   ;;  %884 = vmatprep.mubr.msk.bf16.mxu1 %vm998_vm0, %v997_v0  ;;  %v1081_v7 = vld [vmem:[%s1232_s8 + $0x8] sm:$0xff]  ;;  %v1095_v10 = vld [vmem:[%s1232_s8 + $0x10] sm:$0xff]  ;;  %v1000_v11 = vmov 1   ;;  %vm392_vm2 = vcmask 261120   ;;  %v1003_v54 = vmov 2   ;;  %v37_v57 = vlaneseq }
   0x2   :  { %v975_v2 = vld [vmem:[%s1229_s3] sm:$0xff]   ;;  %968 = vset.pattern.permute.xlu0 %v999_v3  ;;  %883 = vmatpush3.bf16.msra.mxu1 %v974_v1  ;;  %v978_v8 = vld [vmem:[%s1231_s1 + $0x8] sm:$0xff]   ;;  %v1103_v12 = vld [vmem:[%s1232_s8 + $0x18] sm:$0xff] }
   0x3   :  { %v976_v4 = vld [vmem:[%s1230_s2] sm:$0xff]   ;;  %969 = vset.pattern.permute.xlu1 %v1000_v11  ;;  %v980_v25 = vld [vmem:[%s1233_s5 + $0x8] sm:$0xff]   ;;  %v981_v28 = vld [vmem:[%s1233_s5 + $0x10] sm:$0xff]   ;;  %v38_v58 = vand.u32 127, %v37_v57 }
   0x4   :  { %v977_v5 = vld [vmem:[%s1231_s1] sm:$0xff]   ;;  %888 = vmatprep.subr.bf16.mxu1 %v976_v4  ;;  %v982_v32 = vld [vmem:[%s1233_s5 + $0x18] sm:$0xff]   ;;  %v984_v34 = vld [vmem:[%s1233_s5 + $0x28] sm:$0xff]  }
   0x5   :  { %885 = vmatmul.mubr.msk.bf16.vlgmr.msra.gmra.mrb[0].mxu1 %vm82_vm1, %v975_v2  ;;  %v1074_v6 = vld [vmem:[%s1232_s8] sm:$0xff]  ;;  %v986_v36 = vld [vmem:[%s1234_s4 + $0x8] sm:$0xff]   ;;  %v987_v37 = vld [vmem:[%s1234_s4 + $0x10] sm:$0xff]   ;;  %v43_v61 = vand.u32 15, %v38_v58 }
   0x6   :  { %889 = vmatpush3.bf16.msra.mxu1 %v976_v4  ;;  %890 = vmatprep.mubr.msk.bf16.mxu1 %vm82_vm1, %v977_v5  ;;  %v979_v9 = vld [vmem:[%s1233_s5] sm:$0xff]   ;;  %v988_v38 = vld [vmem:[%s1234_s4 + $0x18] sm:$0xff]   ;;  %v990_v40 = vld [vmem:[%s1234_s4 + $0x28] sm:$0xff]  }
   0x7   :  { %63 = vperm.xlu0 %968, %v1074_v6   ;;  %896 = vmatprep.mubr.msk.bf16.mxu0 %vm82_vm1, %v979_v9  ;;  %v983_v33 = vld [vmem:[%s1233_s5 + $0x20] sm:$0xff]   ;;  %vm51_vm3 = vcmp.ne.s32.totalorder %v43_v61, 0  ;;  %vm54_vm4 = vcmp.ne.s32.totalorder %v43_v61, 15 }
   0x8   :  { %525 = vperm.xlu1 %969, %v1074_v6   ;;  %v985_v35 = vld [vmem:[%s1234_s4] sm:$0xff]   ;;  %v1167_v1 = vsel %vm51_vm3, 1.0, %v997_v0  ;;  %v1171_v5 = vsel %vm54_vm4, 1.0, %v997_v0 }
   0x9   :  { %v989_v39 = vld [vmem:[%s1234_s4 + $0x20] sm:$0xff]   ;;  %s1002_s4 = smov 127  }
   0xa   :  { %v991_v53 = vld [vmem:[%s1235_s6] sm:$0xff]  }
   0xb   :  { %68 = vperm.xlu0 %968, %v1081_v7  }
   0xc   :  { %529 = vperm.xlu1 %969, %v1081_v7  }
   0xd   :  { %891 = vmatmul.mubr.msk.bf16.vlgmr.msra.gmra.mrb[4].mxu1 %vm82_vm1, %v978_v8 }
   0xe   :  { %928 = vmatprep.mubr.msk.bf16.mxu1 %vm392_vm2, %v991_v53  ;;  %v1004_v53 = vmov 3  }
   0xf   :  { %970 = vset.pattern.permute.xlu0 %v1000_v11 }
  0x10   :  { %534 = vperm.xlu0 %970, %v1095_v10   ;;  %539 = vperm.xlu1 %969, %v1103_v12  }
  0x14   :  { %972 = vset.pattern.permute.xlu0 %v1003_v54  ;;  %971 = vset.pattern.permute.xlu1 %v1003_v54 }
  0x86   :  { %v64_v13 = vpop.permute.xlu0 %63 }
  0x87   :  { %v526_v55 = vpop.permute.xlu1 %525 }
  0x8a   :  { %v69_v17 = vpop.permute.xlu0 %68 }
  0x8b   :  { %v530_v56 = vpop.permute.xlu1 %529 }
  0x8f   :  { %v540_v59 = vpop.permute.xlu1 %539  ;;  %v535_v60 = vpop.permute.xlu0 %534 }
  0xd8   :  { %v120_v14 = vpop.f32.mrb[0].mxu1 }
  0xd9   :  { %v121_v15 = vadd.f32 %v120_v14, %v64_v13  ;;  %v886_v16 = vpop.f32.mrb[1].mxu1 }
  0xda   :  { %v123_v18 = vpop.f32.mrb[2].mxu1 }
  0xdb   :  { %v124_v19 = vadd.f32 %v123_v18, %v69_v17  ;;  %v887_v20 = vpop.f32.mrb[3].mxu1  ;;  %v127_v21 = vmax.f32 %v121_v15, 0.0 }
  0xdd   :  { %v128_v22 = vmax.f32 %v124_v19, 0.0 }
  0xdf   :  { %v232_v23 = vpack.c.bf16 %v128_v22, %v127_v21 }
  0xe0   :  { %v892_v24 = vpop.f32.mrb[4].mxu1 }
  0xe1   :  { %894 = vmatprep.subr.bf16.mxu0 %v232_v23  ;;  %v191_v26 = vpop.f32.mrb[5].mxu1 }
  0xe2   :  { %895 = vmatpush3.bf16.msra.mxu0 %v232_v23  ;;  %v893_v27 = vpop.f32.mrb[6].mxu1 }
  0xe3   :  { %v219_v29 = vpack.c.bf16 %v893_v27, %v892_v24  ;;  %v194_v30 = vpop.f32.mrb[7].mxu1 }
  0xe4   :  { %v218_v31 = vpack.c.bf16 %v194_v30, %v191_v26 }
  0xe5   :  { %897 = vmatmul.mubr.msk.bf16.vlgmr.msra.gmra.mrb[0].mxu0 %vm82_vm1, %v980_v25 }
  0xe6   :  { %900 = vmatprep.mubr.msk.bf16.mxu0 %vm82_vm1, %v981_v28  ;;  %908 = vmatprep.subr.bf16.mxu0 %v218_v31 }
  0xe7   :  { %909 = vmatpush3.bf16.msra.mxu0 %v218_v31 }
  0xe8   :  { %910 = vmatprep.subr.bf16.mxu0 %v219_v29 }
  0xeb   :  { %911 = vmatpush3.bf16.msra.mxu0 %v219_v29 }
  0xed   :  { %901 = vmatmul.mubr.msk.bf16.gmra.mrb[4].mxu0 %vm82_vm1, %v982_v32 }
  0xee   :  { %904 = vmatprep.mubr.msk.bf16.mxu0 %vm82_vm1, %v983_v33 }
  0xf5   :  { %905 = vmatmul.mubr.msk.bf16.gmra.mrb[8].mxu0 %vm82_vm1, %v984_v34 }
  0xf6   :  { %912 = vmatprep.mubr.msk.bf16.mxu0 %vm392_vm2, %v985_v35 }
  0xfd   :  { %913 = vmatmul.mubr.msk.bf16.vlgmr.msra.gmra.mrb[0].mxu0 %vm392_vm2, %v986_v36  ;;  %v992_v36 = vld [vmem:[%s1235_s6 + $0x8] sm:$0xff]  }
  0xfe   :  { %916 = vmatprep.mubr.msk.bf16.mxu0 %vm392_vm2, %v987_v37  ;;  %v993_v37 = vld [vmem:[%s1235_s6 + $0x10] sm:$0xff]  }
 0x105   :  { %917 = vmatmul.mubr.msk.bf16.gmra.mrb[4].mxu0 %vm392_vm2, %v988_v38  ;;  %v994_v38 = vld [vmem:[%s1235_s6 + $0x18] sm:$0xff]  }
 0x106   :  { %920 = vmatprep.mubr.msk.bf16.mxu0 %vm392_vm2, %v989_v39  ;;  %v995_v39 = vld [vmem:[%s1235_s6 + $0x20] sm:$0xff]  }
 0x10d   :  { %921 = vmatmul.mubr.msk.bf16.gmra.mrb[8].mxu0 %vm392_vm2, %v990_v40  ;;  %v996_v40 = vld [vmem:[%s1235_s6 + $0x28] sm:$0xff]  }
 0x1d0   :  { %v914_v41 = vpop.f32.mrb[0].mxu0 }
 0x1d1   :  { %496 = vrot.lane.b32.xlu1 %v914_v41, %s1001_s21  ;;  %v445_v42 = vpop.f32.mrb[1].mxu0 }
 0x1d2   :  { %492 = vrot.lane.b32.xlu0 %v445_v42, %s1001_s21  ;;  %v915_v43 = vpop.f32.mrb[2].mxu0 }
 0x1d3   :  { %v448_v44 = vpop.f32.mrb[3].mxu0 }
 0x1d5   :  { %494 = vrot.lane.b32.xlu1 %v448_v44, %s1001_s21 }
 0x1d6   :  { %498 = vrot.lane.b32.xlu0 %v915_v43, %s1001_s21 }
 0x1d8   :  { %v918_v45 = vpop.f32.mrb[4].mxu0 }
 0x1d9   :  { %v461_v46 = vpop.f32.mrb[5].mxu0 }
 0x1da   :  { %v919_v47 = vpop.f32.mrb[6].mxu0 }
 0x1db   :  { %v464_v48 = vpop.f32.mrb[7].mxu0 }
 0x1e0   :  { %v922_v49 = vpop.f32.mrb[8].mxu0 }
 0x1e1   :  { %v477_v50 = vpop.f32.mrb[9].mxu0 }
 0x1e2   :  { %504 = vrot.lane.b32.xlu0 %v477_v50, %s1002_s4  ;;  %v923_v51 = vpop.f32.mrb[10].mxu0 }
 0x1e3   :  { %v480_v52 = vpop.f32.mrb[11].mxu0 }
 0x1e4   :  { %506 = vrot.lane.b32.xlu1 %v480_v52, %s1002_s4 }
 0x1e6   :  { %510 = vrot.lane.b32.xlu0 %v923_v51, %s1002_s4 }
 0x1e8   :  { %508 = vrot.lane.b32.xlu1 %v922_v49, %s1002_s4 }
 0x1ea   :  { %730 = vperm.xlu0 %972, %v1081_v7  }
 0x1ec   :  { %726 = vperm.xlu1 %971, %v1074_v6  }
 0x1ee   :  { %734 = vperm.xlu0 %972, %v1095_v10  }
 0x1f0   :  { %738 = vperm.xlu1 %971, %v1103_v12  }
 0x1f2   :  { %973 = vset.pattern.permute.xlu0 %v1004_v53 }
 0x243   :  { %v497_v62 = vpop.permute.xlu1 %496 }
 0x244   :  { %v493_v63 = vpop.permute.xlu0 %492  ;;  %v502_v13 = vmul.f32 %v1167_v1, %v497_v62 }
 0x245   :  { %v500_v4 = vmul.f32 %v1167_v1, %v493_v63 }
 0x246   :  { %v518_v23 = vadd.f32 %v918_v45, %v502_v13 }
 0x247   :  { %v495_v2 = vpop.permute.xlu1 %494  ;;  %v516_v9 = vadd.f32 %v500_v4, %v461_v46 }
 0x248   :  { %v499_v3 = vpop.permute.xlu0 %498  ;;  %v501_v7 = vmul.f32 %v1167_v1, %v495_v2 }
 0x249   :  { %v503_v10 = vmul.f32 %v1167_v1, %v499_v3 }
 0x24a   :  { %v517_v14 = vadd.f32 %v501_v7, %v464_v48 }
 0x24b   :  { %v519_v18 = vadd.f32 %v919_v47, %v503_v10 }
 0x254   :  { %v505_v8 = vpop.permute.xlu0 %504 }
 0x255   :  { %v512_v11 = vmul.f32 %v1171_v5, %v505_v8 }
 0x256   :  { %v507_v12 = vpop.permute.xlu1 %506 }
 0x257   :  { %v520_v15 = vadd.f32 %v516_v9, %v512_v11  ;;  %v513_v16 = vmul.f32 %v1171_v5, %v507_v12 }
 0x258   :  { %v511_v17 = vpop.permute.xlu0 %510 }
 0x259   :  { %v542_v19 = vadd.f32 %v526_v55, %v520_v15  ;;  %v521_v20 = vadd.f32 %v517_v14, %v513_v16  ;;  %v515_v21 = vmul.f32 %v1171_v5, %v511_v17 }
 0x25a   :  { %v509_v22 = vpop.permute.xlu1 %508 }
 0x25b   :  { %v543_v24 = vadd.f32 %v530_v56, %v521_v20  ;;  %v523_v25 = vadd.f32 %v519_v18, %v515_v21  ;;  %v514_v26 = vmul.f32 %v1171_v5, %v509_v22  ;;  %v546_v27 = vmax.f32 %v542_v19, 0.0 }
 0x25d   :  { %v547_v28 = vmax.f32 %v543_v24, 0.0  ;;  %v545_v29 = vadd.f32 %v540_v59, %v523_v25  ;;  %v522_v30 = vadd.f32 %v518_v23, %v514_v26 }
 0x25f   :  { %v544_v31 = vadd.f32 %v535_v60, %v522_v30  ;;  %v562_v32 = vpack.c.bf16 %v547_v28, %v546_v27  ;;  %v549_v33 = vmax.f32 %v545_v29, 0.0  ;;  %v749_v30 = vld [vmem:[%s1236_s7] sm:$0xf] }
 0x261   :  { %v548_v34 = vmax.f32 %v544_v31, 0.0  ;;  %924 = vmatprep.subr.bf16.mxu1 %v562_v32 }
 0x262   :  { %925 = vmatpush3.bf16.msra.mxu1 %v562_v32 }
 0x263   :  { %v563_v35 = vpack.c.bf16 %v549_v33, %v548_v34 }
 0x265   :  { %926 = vmatprep.subr.bf16.mxu1 %v563_v35 }
 0x266   :  { %927 = vmatpush3.bf16.msra.mxu1 %v563_v35 }
 0x267   :  { %940 = vmatprep.subr.bf16.mxu1 %v997_v0 }
 0x269   :  { %929 = vmatmul.mubr.msk.bf16.vlgmr.msra.gmra.mrb[8].mxu1 %vm392_vm2, %v992_v36  ;;  %v731_v56 = vpop.permute.xlu0 %730 }
 0x26a   :  { %932 = vmatprep.mubr.msk.bf16.mxu1 %vm392_vm2, %v993_v37 }
 0x26b   :  { %v727_v54 = vpop.permute.xlu1 %726 }
 0x26d   :  { %v735_v58 = vpop.permute.xlu0 %734 }
 0x26f   :  { %v739_v55 = vpop.permute.xlu1 %738 }
 0x271   :  { %933 = vmatmul.mubr.msk.bf16.gmra.mrb[12].mxu1 %vm392_vm2, %v994_v38 }
 0x272   :  { %936 = vmatprep.mubr.msk.bf16.mxu1 %vm392_vm2, %v995_v39 }
 0x279   :  { %937 = vmatmul.mubr.msk.bf16.gmra.mrb[16].mxu1 %vm392_vm2, %v996_v40 }
 0x27a   :  { %944 = vmatprep.mubr.msk.bf16.mxu1 %vm998_vm0, %v997_v0 }
 0x33c   :  { %v930_v41 = vpop.f32.mrb[8].mxu1 }
 0x33d   :  { %697 = vrot.lane.b32.xlu0 %v930_v41, %s1001_s21  ;;  %v646_v42 = vpop.f32.mrb[9].mxu1 }
 0x33e   :  { %693 = vrot.lane.b32.xlu1 %v646_v42, %s1001_s21  ;;  %v931_v43 = vpop.f32.mrb[10].mxu1 }
 0x33f   :  { %v649_v44 = vpop.f32.mrb[11].mxu1 }
 0x342   :  { %699 = vrot.lane.b32.xlu1 %v931_v43, %s1001_s21 }
 0x344   :  { %v934_v45 = vpop.f32.mrb[12].mxu1 }
 0x345   :  { %v662_v46 = vpop.f32.mrb[13].mxu1 }
 0x346   :  { %695 = vrot.lane.b32.xlu1 %v649_v44, %s1001_s21  ;;  %v935_v47 = vpop.f32.mrb[14].mxu1 }
 0x347   :  { %v665_v48 = vpop.f32.mrb[15].mxu1 }
 0x34c   :  { %v938_v49 = vpop.f32.mrb[16].mxu1 }
 0x34d   :  { %v678_v50 = vpop.f32.mrb[17].mxu1 }
 0x34e   :  { %705 = vrot.lane.b32.xlu0 %v678_v50, %s1002_s4  ;;  %v939_v51 = vpop.f32.mrb[18].mxu1 }
 0x34f   :  { %v681_v52 = vpop.f32.mrb[19].mxu1 }
 0x350   :  { %707 = vrot.lane.b32.xlu1 %v681_v52, %s1002_s4 }
 0x352   :  { %709 = vrot.lane.b32.xlu0 %v938_v49, %s1002_s4 }
 0x354   :  { %711 = vrot.lane.b32.xlu1 %v939_v51, %s1002_s4 }
 0x356   :  { %753 = vperm.xlu0 %973, %v1074_v6  }
 0x3af   :  { %v698_v60 = vpop.permute.xlu0 %697 }
 0x3b0   :  { %v694_v57 = vpop.permute.xlu1 %693  ;;  %v703_v3 = vmul.f32 %v1167_v1, %v698_v60 }
 0x3b1   :  { %v701_v62 = vmul.f32 %v1167_v1, %v694_v57 }
 0x3b2   :  { %v719_v13 = vadd.f32 %v934_v45, %v703_v3 }
 0x3b3   :  { %v717_v4 = vadd.f32 %v701_v62, %v662_v46 }
 0x3b4   :  { %v700_v59 = vpop.permute.xlu1 %699 }
 0x3b5   :  { %v704_v6 = vmul.f32 %v1167_v1, %v700_v59 }
 0x3b7   :  { %v720_v18 = vadd.f32 %v935_v47, %v704_v6 }
 0x3b8   :  { %v696_v61 = vpop.permute.xlu1 %695 }
 0x3b9   :  { %v702_v63 = vmul.f32 %v1167_v1, %v696_v61 }
 0x3bb   :  { %v718_v9 = vadd.f32 %v702_v63, %v665_v48 }
 0x3c0   :  { %v706_v2 = vpop.permute.xlu0 %705 }
 0x3c1   :  { %v713_v7 = vmul.f32 %v1171_v5, %v706_v2 }
 0x3c2   :  { %v708_v8 = vpop.permute.xlu1 %707 }
 0x3c3   :  { %v721_v10 = vadd.f32 %v717_v4, %v713_v7  ;;  %v714_v11 = vmul.f32 %v1171_v5, %v708_v8 }
 0x3c4   :  { %v710_v12 = vpop.permute.xlu0 %709 }
 0x3c5   :  { %v741_v14 = vadd.f32 %v727_v54, %v721_v10  ;;  %v722_v15 = vadd.f32 %v718_v9, %v714_v11  ;;  %v715_v16 = vmul.f32 %v1171_v5, %v710_v12 }
 0x3c6   :  { %v712_v17 = vpop.permute.xlu1 %711 }
 0x3c7   :  { %v742_v19 = vadd.f32 %v731_v56, %v722_v15  ;;  %v723_v20 = vadd.f32 %v719_v13, %v715_v16  ;;  %v716_v21 = vmul.f32 %v1171_v5, %v712_v17  ;;  %v745_v22 = vmax.f32 %v741_v14, 0.0 }
 0x3c9   :  { %v746_v23 = vmax.f32 %v742_v19, 0.0  ;;  %v743_v24 = vadd.f32 %v735_v58, %v723_v20  ;;  %v724_v1 = vadd.f32 %v720_v18, %v716_v21 }
 0x3cb   :  { %v750_v25 = vpack.c.bf16 %v746_v23, %v745_v22  ;;  %v744_v26 = vadd.f32 %v739_v55, %v724_v1  ;;  %v747_v27 = vmax.f32 %v743_v24, 0.0 }
 0x3cd   :  { %v748_v28 = vmax.f32 %v744_v26, 0.0  ;;  %941 = vmatpush3.bf16.msra.mxu1 %v750_v25 }
 0x3ce   :  { %942 = vmatprep.subr.bf16.mxu1 %v997_v0 }
 0x3cf   :  { %v751_v29 = vpack.c.bf16 %v748_v28, %v747_v27 }
 0x3d1   :  { %943 = vmatpush3.bf16.msra.mxu1 %v751_v29 }
 0x3d4   :  { %945 = vmatmul.mubr.msk.bf16.vlgmr.msra.gmra.mrb[20].mxu1 %vm392_vm2, %v749_v30 }
 0x3d5   :  { %v754_v5 = vpop.permute.xlu0 %753 }
 0x4a7   :  { %v793_v31 = vpop.f32.mrb[20].mxu1 }
 0x4a8   :  { %v946_v32 = vpop.f32.mrb[21].mxu1  ;;  %v794_v33 = vadd.f32 %v793_v31, %v754_v5 }
 0x4a9   :  { %v796_v34 = vpop.f32.mrb[22].mxu1 }
 0x4aa   :  { %799 = vst [vmem:[%s1237_s9] sm:$0xff] %v794_v33  ;;  %v947_v35 = vpop.f32.mrb[23].mxu1 }

</bundles_post_ra>
